<compile_context>
chip_gen: v7x
topology: tpu7x:2x2x1
jax: 0.10.0
libtpu: 0.0.40
codegen_flags: <defaults>
</compile_context>

<pallas_src>
import functools

import jax
import jax.numpy as jnp
from jax.experimental import pallas as pl
from jax.experimental.pallas import tpu as pltpu


def _round_up(a: int, m: int) -> int:
    return ((a + m - 1) // m) * m


def nn_tfidf_kernel(x_ref, w1_ref, b1_ref, w2_ref, b2_ref, w3_ref, b3_ref, o_ref):
    # fc1 + relu (f32 accumulation on the MXU; x / w1 may be bf16)
    h1 = jnp.dot(x_ref[...], w1_ref[...], preferred_element_type=jnp.float32)
    h1 = jnp.maximum(h1 + b1_ref[...], 0.0)          # (TM,50) + (1,50) broadcast
    # dropout1 -> identity (eval mode)

    # fc2 + relu — keep the f32 hidden activations as-is (no .astype casts; w2/w3 are
    # tiny and f32, so the MXU eats an f32 LHS for free while it sits <10% occupied)
    h2 = jnp.dot(h1, w2_ref[...], preferred_element_type=jnp.float32)
    h2 = jnp.maximum(h2 + b2_ref[...], 0.0)
    # dropout2 -> identity (eval mode)

    # fc3
    logits = jnp.dot(h2, w3_ref[...], preferred_element_type=jnp.float32)
    logits = logits + b3_ref[...]

    # Transpose (TM, 4) -> (4, TM) BEFORE the softmax:
    #   * exp / sub / div run on lane-dense vregs (~16x fewer VALU/EUP pushes)
    #   * the output store is a lane-dense (4, TM) block (no masked vst / strided DMA)
    lt = logits.T                                     # (N3, TM)
    m = jnp.max(lt, axis=0, keepdims=True)
    e = jnp.exp(lt - m)
    denom = jnp.sum(e, axis=0, keepdims=True)
    # Exact divide so every output row sums to 1 (approx reciprocal broke this).
    o_ref[...] = (e / denom).astype(o_ref.dtype)


@functools.partial(jax.jit, static_argnames=("block_b",))
def nn_tfidf_forward(x, w1, b1, w2, b2, w3, b3, *, block_b: int = 4096):
    """x: (B, 300). Weights are (in, out); biases are (1, out). Returns (B, 4) f32.

    Fast path: pass x (and optionally w1) as bf16; keep w2/b*/w3 in f32.
    """
    B, K = x.shape
    N1 = w1.shape[1]
    N2 = w2.shape[1]
    N3 = w3.shape[1]

    # Batch tile must be a multiple of 128 so that
    #   * the (tm, K) x block satisfies the sublane rule, and
    #   * the transposed (N3, tm) output block is lane-aligned.
    tm = min(_round_up(block_b, 128), _round_up(B, 128))
    bp = _round_up(B, tm)
    if bp != B:
        x = jnp.pad(x, ((0, bp - B), (0, 0)))
    grid = (bp // tm,)

    # --- cost estimate (advisory, helps XLA schedule around this HBM-bound call) ---
    flops = 2 * bp * (K * N1 + N1 * N2 + N2 * N3)
    bytes_accessed = (
        bp * K * x.dtype.itemsize
        + K * N1 * w1.dtype.itemsize + N1 * b1.dtype.itemsize
        + N1 * N2 * w2.dtype.itemsize + N2 * b2.dtype.itemsize
        + N2 * N3 * w3.dtype.itemsize + N3 * b3.dtype.itemsize
        + bp * N3 * 4
    )
    cost = pl.CostEstimate(
        flops=flops,
        transcendentals=bp * N3,  # exp per class per row
        bytes_accessed=bytes_accessed,
    )

    # --- explicit VMEM accounting (lane/sublane padded sizes) ---
    lane = lambda n: _round_up(n, 128)
    sub = lambda n: _round_up(n, 8)
    w_bytes = (
        sub(K) * lane(N1) * w1.dtype.itemsize + sub(1) * lane(N1) * b1.dtype.itemsize
        + sub(N1) * lane(N2) * w2.dtype.itemsize + sub(1) * lane(N2) * b2.dtype.itemsize
        + sub(N2) * lane(N3) * w3.dtype.itemsize + sub(1) * lane(N3) * b3.dtype.itemsize
    )
    vmem_est = (
        2 * tm * lane(K) * x.dtype.itemsize   # double-buffered x block (K pads 300->384)
        + 2 * sub(N3) * tm * 4                # double-buffered transposed out block
        + 2 * w_bytes                         # resident (possibly double-buffered) params
        + 4 * tm * lane(N1) * 4               # h1/h2/logits-style f32 intermediates
    )
    # ~50% headroom; floor at the common 32 MiB scoped default, cap below v5e/v6e physical.
    vmem_limit = max(32 * 2**20, min(int(vmem_est * 3 // 2), 96 * 2**20))

    const2d = lambda i: (0, 0)  # weights/biases stay VMEM-resident across grid steps

    out_t = pl.pallas_call(
        nn_tfidf_kernel,
        out_shape=jax.ShapeDtypeStruct((N3, bp), jnp.float32),
        grid=grid,
        in_specs=[
            pl.BlockSpec((tm, K), lambda i: (i, 0)),   # streamed + double-buffered
            pl.BlockSpec(w1.shape, const2d),
            pl.BlockSpec(b1.shape, const2d),
            pl.BlockSpec(w2.shape, const2d),
            pl.BlockSpec(b2.shape, const2d),
            pl.BlockSpec(w3.shape, const2d),
            pl.BlockSpec(b3.shape, const2d),
        ],
        out_specs=pl.BlockSpec((N3, tm), lambda i: (0, i)),  # lane-dense transposed block
        compiler_params=pltpu.CompilerParams(
            dimension_semantics=("parallel",),  # lets v7x shard batch blocks over 2 TCs
            vmem_limit_bytes=vmem_limit,
        ),
        cost_estimate=cost,
    )(x, w1, b1, w2, b2, w3, b3)

    out = out_t.T  # (bp, 4); tiny XLA transpose outside the kernel
    return out[:B] if bp != B else out


def init_params(key):
    """Deterministic param init matching nn.Linear shapes (stored transposed)."""
    k1, k2, k3, k4, k5, k6 = jax.random.split(key, 6)

    def linear(kw, kb, fan_in, fan_out):
        bound = 1.0 / jnp.sqrt(fan_in)
        # PyTorch weight is (out, in); store transposed as (in, out).
        w = jax.random.uniform(kw, (fan_in, fan_out), jnp.float32, -bound, bound)
        b = jax.random.uniform(kb, (1, fan_out), jnp.float32, -bound, bound)
        return w, b

    w1, b1 = linear(k1, k2, 300, 50)
    w2, b2 = linear(k3, k4, 50, 30)
    w3, b3 = linear(k5, k6, 30, 4)
    return w1, b1, w2, b2, w3, b3


def reference(x, w1, b1, w2, b2, w3, b3):
    f32 = jnp.float32
    dot = lambda a, b: jnp.dot(a.astype(f32), b.astype(f32),
                               precision=jax.lax.Precision.HIGHEST)
    h1 = jnp.maximum(dot(x, w1) + b1, 0.0)
    h2 = jnp.maximum(dot(h1, w2) + b2, 0.0)
    logits = dot(h2, w3) + b3
    return jax.nn.softmax(logits, axis=-1)


if __name__ == "__main__":
    key = jax.random.PRNGKey(0)
    kx, kx2, kp = jax.random.split(key, 3)

    w1, b1, w2, b2, w3, b3 = init_params(kp)

    # --- Small batch, f32 path (single grid step, batch pads 8 -> 128) ---
    B = 8
    x = jax.random.normal(kx, (B, 300), jnp.float32)
    out = jax.block_until_ready(nn_tfidf_forward(x, w1, b1, w2, b2, w3, b3))
    ref = reference(x, w1, b1, w2, b2, w3, b3)
    assert out.shape == (B, 4)
    assert jnp.allclose(out, ref, atol=2e-3, rtol=2e-3)
    assert jnp.allclose(jnp.sum(out, axis=-1), 1.0, atol=1e-3)

    # --- Larger, non-multiple batch: multi-step grid + padding (B=300, tm=128, grid=(3,)) ---
    B2 = 300
    x2 = jax.random.normal(kx2, (B2, 300), jnp.float32)
    out2 = jax.block_until_ready(
        nn_tfidf_forward(x2, w1, b1, w2, b2, w3, b3, block_b=128))
    ref2 = reference(x2, w1, b1, w2, b2, w3, b3)
    assert out2.shape == (B2, 4)
    assert jnp.allclose(out2, ref2, atol=2e-3, rtol=2e-3)
    assert jnp.allclose(jnp.sum(out2, axis=-1), 1.0, atol=1e-3)

    # --- bf16 fast path: bf16 x + w1 (≈99% of HBM bytes); w2/w3/biases stay f32 ---
    bf = jnp.bfloat16
    out3 = jax.block_until_ready(
        nn_tfidf_forward(x2.astype(bf), w1.astype(bf), b1, w2, b2, w3, b3, block_b=128))
    assert out3.shape == (B2, 4)
    assert out3.dtype == jnp.float32
    assert jnp.allclose(out3, ref2, atol=3e-2, rtol=3e-2)
    assert jnp.allclose(jnp.sum(out3, axis=-1), 1.0, atol=1e-3)

    print("KERNEL_OK")
</pallas_src>

<mosaic_0001>
module attributes {stable_mosaic.version = 11 : i64} {
  func.func @nn_tfidf_kernel(%arg0: i32, %arg1: memref<128x300xf32, #tpu.memory_space<vmem>>, %arg2: memref<300x50xf32, #tpu.memory_space<vmem>>, %arg3: memref<1x50xf32, #tpu.memory_space<vmem>>, %arg4: memref<50x30xf32, #tpu.memory_space<vmem>>, %arg5: memref<1x30xf32, #tpu.memory_space<vmem>>, %arg6: memref<30x4xf32, #tpu.memory_space<vmem>>, %arg7: memref<1x4xf32, #tpu.memory_space<vmem>>, %arg8: memref<4x128xf32, #tpu.memory_space<vmem>>) attributes {dimension_semantics = [#tpu.dimension_semantics<parallel>], iteration_bounds = array<i64: 1>, scalar_prefetch = 0 : i64, scratch_operands = 0 : i64, tpu.core_type = #tpu.core_type<tc>, window_params = [{transform_indices = @transform_0, window_bounds = array<i64: 128, 300>}, {pipeline_mode = #tpu.pipeline_mode<synchronous>, transform_indices = @transform_1, window_bounds = array<i64: 300, 50>}, {pipeline_mode = #tpu.pipeline_mode<synchronous>, transform_indices = @transform_2, window_bounds = array<i64: 1, 50>}, {pipeline_mode = #tpu.pipeline_mode<synchronous>, transform_indices = @transform_3, window_bounds = array<i64: 50, 30>}, {pipeline_mode = #tpu.pipeline_mode<synchronous>, transform_indices = @transform_4, window_bounds = array<i64: 1, 30>}, {pipeline_mode = #tpu.pipeline_mode<synchronous>, transform_indices = @transform_5, window_bounds = array<i64: 30, 4>}, {pipeline_mode = #tpu.pipeline_mode<synchronous>, transform_indices = @transform_6, window_bounds = array<i64: 1, 4>}, {transform_indices = @transform_7, window_bounds = array<i64: 4, 128>}]} {
    %c0 = arith.constant 0 : index
    %c0_0 = arith.constant 0 : index
    %0 = vector.load %arg1[%c0, %c0_0] : memref<128x300xf32, #tpu.memory_space<vmem>>, vector<128x300xf32>
    %c0_1 = arith.constant 0 : index
    %c0_2 = arith.constant 0 : index
    %1 = vector.load %arg2[%c0_1, %c0_2] : memref<300x50xf32, #tpu.memory_space<vmem>>, vector<300x50xf32>
    %cst = arith.constant dense<0.000000e+00> : vector<128x50xf32>
    %2 = tpu.matmul %0, %1, %cst {dimension_numbers = #tpu.dot_dimension_numbers<[1], [0], [0], [1], [0, 0, 1, 1], [], []>} : vector<128x300xf32>, vector<300x50xf32>, vector<128x50xf32> -> vector<128x50xf32>
    %c0_3 = arith.constant 0 : index
    %c0_4 = arith.constant 0 : index
    %3 = vector.load %arg3[%c0_3, %c0_4] : memref<1x50xf32, #tpu.memory_space<vmem>>, vector<1x50xf32>
    %4 = vector.broadcast %3 : vector<1x50xf32> to vector<128x50xf32>
    %5 = arith.addf %2, %4 : vector<128x50xf32>
    %cst_5 = arith.constant 0.000000e+00 : f32
    %6 = vector.broadcast %cst_5 : f32 to vector<128x50xf32>
    %7 = arith.maximumf %5, %6 : vector<128x50xf32>
    %c0_6 = arith.constant 0 : index
    %c0_7 = arith.constant 0 : index
    %8 = vector.load %arg4[%c0_6, %c0_7] : memref<50x30xf32, #tpu.memory_space<vmem>>, vector<50x30xf32>
    %cst_8 = arith.constant dense<0.000000e+00> : vector<128x30xf32>
    %9 = tpu.matmul %7, %8, %cst_8 {dimension_numbers = #tpu.dot_dimension_numbers<[1], [0], [0], [1], [0, 0, 1, 1], [], []>} : vector<128x50xf32>, vector<50x30xf32>, vector<128x30xf32> -> vector<128x30xf32>
    %c0_9 = arith.constant 0 : index
    %c0_10 = arith.constant 0 : index
    %10 = vector.load %arg5[%c0_9, %c0_10] : memref<1x30xf32, #tpu.memory_space<vmem>>, vector<1x30xf32>
    %11 = vector.broadcast %10 : vector<1x30xf32> to vector<128x30xf32>
    %12 = arith.addf %9, %11 : vector<128x30xf32>
    %cst_11 = arith.constant 0.000000e+00 : f32
    %13 = vector.broadcast %cst_11 : f32 to vector<128x30xf32>
    %14 = arith.maximumf %12, %13 : vector<128x30xf32>
    %c0_12 = arith.constant 0 : index
    %c0_13 = arith.constant 0 : index
    %15 = vector.load %arg6[%c0_12, %c0_13] : memref<30x4xf32, #tpu.memory_space<vmem>>, vector<30x4xf32>
    %cst_14 = arith.constant dense<0.000000e+00> : vector<128x4xf32>
    %16 = tpu.matmul %14, %15, %cst_14 {dimension_numbers = #tpu.dot_dimension_numbers<[1], [0], [0], [1], [0, 0, 1, 1], [], []>} : vector<128x30xf32>, vector<30x4xf32>, vector<128x4xf32> -> vector<128x4xf32>
    %c0_15 = arith.constant 0 : index
    %c0_16 = arith.constant 0 : index
    %17 = vector.load %arg7[%c0_15, %c0_16] : memref<1x4xf32, #tpu.memory_space<vmem>>, vector<1x4xf32>
    %18 = vector.broadcast %17 : vector<1x4xf32> to vector<128x4xf32>
    %19 = arith.addf %16, %18 : vector<128x4xf32>
    %20 = tpu.transpose %19, [1, 0] : vector<128x4xf32> -> vector<4x128xf32>
    %cst_17 = arith.constant dense<0xFF800000> : vector<128xf32>
    %21 = vector.multi_reduction <maximumf>, %20, %cst_17 [0] : vector<4x128xf32> to vector<128xf32>
    %22 = vector.shape_cast %21 : vector<128xf32> to vector<1x128xf32>
    %23 = vector.broadcast %22 : vector<1x128xf32> to vector<4x128xf32>
    %24 = arith.subf %20, %23 : vector<4x128xf32>
    %25 = math.exp %24 : vector<4x128xf32>
    %cst_18 = arith.constant dense<0.000000e+00> : vector<128xf32>
    %26 = vector.multi_reduction <add>, %25, %cst_18 [0] : vector<4x128xf32> to vector<128xf32>
    %27 = vector.shape_cast %26 : vector<128xf32> to vector<1x128xf32>
    %28 = vector.broadcast %27 : vector<1x128xf32> to vector<4x128xf32>
    %29 = arith.divf %25, %28 : vector<4x128xf32>
    %c0_19 = arith.constant 0 : index
    %c0_20 = arith.constant 0 : index
    %30 = vector.load %arg8[%c0_19, %c0_20] : memref<4x128xf32, #tpu.memory_space<vmem>>, vector<4x128xf32>
    tpu.vector_store %arg8[%c0_19, %c0_20], %29 {strides = array<i32>} : memref<4x128xf32, #tpu.memory_space<vmem>>, vector<4x128xf32>,
    return
  }
  func.func @transform_0(%arg0: i32) -> (i32, i32) {
    %c0_i32 = arith.constant 0 : i32
    %c0_i32_0 = arith.constant 0 : i32
    return %arg0, %c0_i32 : i32, i32
  }
  func.func @transform_1(%arg0: i32) -> (i32, i32) {
    %c0_i32 = arith.constant 0 : i32
    %c0_i32_0 = arith.constant 0 : i32
    %c0_i32_1 = arith.constant 0 : i32
    return %c0_i32, %c0_i32_0 : i32, i32
  }
  func.func @transform_2(%arg0: i32) -> (i32, i32) {
    %c0_i32 = arith.constant 0 : i32
    %c0_i32_0 = arith.constant 0 : i32
    %c0_i32_1 = arith.constant 0 : i32
    return %c0_i32, %c0_i32_0 : i32, i32
  }
  func.func @transform_3(%arg0: i32) -> (i32, i32) {
    %c0_i32 = arith.constant 0 : i32
    %c0_i32_0 = arith.constant 0 : i32
    %c0_i32_1 = arith.constant 0 : i32
    return %c0_i32, %c0_i32_0 : i32, i32
  }
  func.func @transform_4(%arg0: i32) -> (i32, i32) {
    %c0_i32 = arith.constant 0 : i32
    %c0_i32_0 = arith.constant 0 : i32
    %c0_i32_1 = arith.constant 0 : i32
    return %c0_i32, %c0_i32_0 : i32, i32
  }
  func.func @transform_5(%arg0: i32) -> (i32, i32) {
    %c0_i32 = arith.constant 0 : i32
    %c0_i32_0 = arith.constant 0 : i32
    %c0_i32_1 = arith.constant 0 : i32
    return %c0_i32, %c0_i32_0 : i32, i32
  }
  func.func @transform_6(%arg0: i32) -> (i32, i32) {
    %c0_i32 = arith.constant 0 : i32
    %c0_i32_0 = arith.constant 0 : i32
    %c0_i32_1 = arith.constant 0 : i32
    return %c0_i32, %c0_i32_0 : i32, i32
  }
  func.func @transform_7(%arg0: i32) -> (i32, i32) {
    %c0_i32 = arith.constant 0 : i32
    %c0_i32_0 = arith.constant 0 : i32
    return %c0_i32, %arg0 : i32, i32
  }
}

</mosaic_0001>

<bundles_post_ra>
// kernel: nn_tfidf_forward.1
= control target key start
LH: loop header
LB: loop body
LE: loop exit
PB: predicated region body
PF: predicated region fallthrough
CT: control target
= control target key end

     0   :  { %vm169_vm0 = vcmask 1043456   ;;  %vm120_vm1 = vcmask 359424   ;;  %vm1391_vm2 = vmmov 1   ;;  %s1883_s0 = inlined_call_operand.vmem [shape: f32[128,300], index: 0, kind: input, shape index: {}]   ;;  %s1884_s1 = inlined_call_operand.vmem [shape: f32[300,50], index: 1, kind: input, shape index: {}]   ;;  %s1885_s2 = inlined_call_operand.vmem [shape: f32[1,50], index: 2, kind: input, shape index: {}]   ;;  %s1886_s3 = inlined_call_operand.vmem [shape: f32[50,30], index: 3, kind: input, shape index: {}]   ;;  %s1887_s4 = inlined_call_operand.vmem [shape: f32[1,30], index: 4, kind: input, shape index: {}]   ;;  %s1888_s5 = inlined_call_operand.vmem [shape: f32[30,4], index: 5, kind: input, shape index: {}]   ;;  %s1889_s6 = inlined_call_operand.vmem [shape: f32[1,4], index: 6, kind: input, shape index: {}]   ;;  %s1890_s7 = inlined_call_operand.hbm [shape: f32[4,128], index: 7, kind: output, shape index: {}]  }
   0x1   :  { %v91_v0 = vld [vmem:[%s1884_s1 + $0x80] sm:$0xff]  ;;  %v92_v1 = vld [vmem:[%s1884_s1 + $0x88] sm:$0xff]  ;;  %v93_v5 = vld [vmem:[%s1884_s1 + $0x90] sm:$0xff] }
   0x2   :  { %v75_v2 = vld [vmem:[%s1884_s1] sm:$0xff]  ;;  %v1287_v3 = vpack.c.bf16 %v92_v1, %v91_v0  ;;  %v76_v4 = vld [vmem:[%s1884_s1 + $0x8] sm:$0xff]  ;;  %v94_v6 = vld [vmem:[%s1884_s1 + $0x98] sm:$0xff] }
   0x3   :  { %v1289_v7 = vpack.c.bf16 %v76_v4, %v75_v2  ;;  %v1291_v8 = vpack.c.bf16 %v94_v6, %v93_v5  ;;  %v77_v9 = vld [vmem:[%s1884_s1 + $0x10] sm:$0xff]  ;;  %v78_v10 = vld [vmem:[%s1884_s1 + $0x18] sm:$0xff]  ;;  %v95_v11 = vld [vmem:[%s1884_s1 + $0xa0] sm:$0xff] }
   0x4   :  { %1288 = vmatprep.subr.bf16.mxu0 %v1287_v3  ;;  %v96_v12 = vld [vmem:[%s1884_s1 + $0xa8] sm:$0xff]  ;;  %v1293_v13 = vpack.c.bf16 %v78_v10, %v77_v9  ;;  %v79_v15 = vld [vmem:[%s1884_s1 + $0x20] sm:$0xff]  ;;  %v97_v17 = vld [vmem:[%s1884_s1 + $0xb0] sm:$0xff] }
   0x5   :  { %1290 = vmatpush3.bf16.msra.mxu0 %v1289_v7  ;;  %v1295_v14 = vpack.c.bf16 %v96_v12, %v95_v11  ;;  %v80_v16 = vld [vmem:[%s1884_s1 + $0x28] sm:$0xff]  ;;  %v98_v18 = vld [vmem:[%s1884_s1 + $0xb8] sm:$0xff]  ;;  %v81_v21 = vld [vmem:[%s1884_s1 + $0x30] sm:$0xff] }
   0x6   :  { %1292 = vmatprep.subr.bf16.mxu0 %v1291_v8  ;;  %v1297_v19 = vpack.c.bf16 %v80_v16, %v79_v15  ;;  %v1299_v20 = vpack.c.bf16 %v98_v18, %v97_v17  ;;  %v82_v22 = vld [vmem:[%s1884_s1 + $0x38] sm:$0xff]  ;;  %v99_v23 = vld [vmem:[%s1884_s1 + $0xc0] sm:$0xff]  ;;  %v100_v24 = vld [vmem:[%s1884_s1 + $0xc8] sm:$0xff] }
   0x7   :  { %v28_v25 = vld [vmem:[%s1883_s0 + $0x8] sm:$0xff]  ;;  %v107_v26 = vld [vmem:[%s1884_s1 + $0x100] sm:$0xff]  ;;  %v1301_v28 = vpack.c.bf16 %v82_v22, %v81_v21  ;;  %v109_v31 = vld [vmem:[%s1884_s1 + $0x110] sm:$0xff]  ;;  %v1303_v32 = vpack.c.bf16 %v100_v24, %v99_v23 }
   0x8   :  { %237 = vmatprep.mubr.f32.mxu0 %v28_v25  ;;  %v108_v27 = vld [vmem:[%s1884_s1 + $0x108] sm:$0xff]  ;;  %v83_v29 = vld [vmem:[%s1884_s1 + $0x40] sm:$0xff]  ;;  %v101_v34 = vld [vmem:[%s1884_s1 + $0xd0] sm:$0xff] }
   0x9   :  { %1294 = vmatpush3.bf16.msra.mxu0 %v1293_v13  ;;  %v1499_v30 = vpack.c.bf16 %v108_v27, %v107_v26  ;;  %v84_v33 = vld [vmem:[%s1884_s1 + $0x48] sm:$0xff]  ;;  %v110_v35 = vld [vmem:[%s1884_s1 + $0x118] sm:$0xff]  ;;  %v111_v38 = vld [vmem:[%s1884_s1 + $0x120] sm:$0xff] }
   0xa   :  { %1296 = vmatprep.subr.bf16.mxu0 %v1295_v14  ;;  %v102_v36 = vld [vmem:[%s1884_s1 + $0xd8] sm:$0xff]  ;;  %v1517_v37 = vpack.c.bf16 %v110_v35, %v109_v31  ;;  %v112_v39 = vld [vmem:[%s1884_s1 + $0x128] sm:$0xf]  ;;  %v35_v40 = vld [vmem:[%s1883_s0 + $0x40] sm:$0xff]  ;;  %v1305_v41 = vpack.c.bf16 %v84_v33, %v83_v29 }
   0xb   :  { %1355 = vmatprep.subr.bf16.mxu1 %v1499_v30  ;;  %v1530_v42 = vpack.c.bf16 %v112_v39, %v111_v38  ;;  %v1307_v43 = vpack.c.bf16 %v102_v36, %v101_v34  ;;  %v85_v44 = vld [vmem:[%s1884_s1 + $0x50] sm:$0xff]  ;;  %v86_v45 = vld [vmem:[%s1884_s1 + $0x58] sm:$0xff]  ;;  %vm1540_vm3 = vmpackc.low %vm169_vm0, %vm1391_vm2  ;;  %1196 = vmatprep.mubr.msk.f32.mxu1 %vm120_vm1, %v35_v40 }
   0xc   :  { %1358 = vmatpush3.bf16.msra.mxu1 %v1499_v30  ;;  %v103_v47 = vld [vmem:[%s1884_s1 + $0xe0] sm:$0xff]  ;;  %v104_v48 = vld [vmem:[%s1884_s1 + $0xe8] sm:$0xff]  ;;  %v1309_v49 = vpack.c.bf16 %v86_v45, %v85_v44  ;;  %v105_v53 = vld [vmem:[%s1884_s1 + $0xf0] sm:$0xff] }
   0xd   :  { %1298 = vmatpush3.bf16.msra.mxu0 %v1297_v19  ;;  %1356 = vmatprep.subr.bf16.mxu1 %v1517_v37  ;;  %v1311_v50 = vpack.c.bf16 %v104_v48, %v103_v47  ;;  %v87_v51 = vld [vmem:[%s1884_s1 + $0x60] sm:$0xff]  ;;  %v88_v52 = vld [vmem:[%s1884_s1 + $0x68] sm:$0xff]  ;;  %v106_v54 = vld [vmem:[%s1884_s1 + $0xf8] sm:$0xff] }
   0xe   :  { %1300 = vmatprep.subr.bf16.mxu0 %v1299_v20  ;;  %v38_v55 = vld [vmem:[%s1883_s0 + $0x58] sm:$0xff]  ;;  %v1313_v56 = vpack.c.bf16 %v88_v52, %v87_v51  ;;  %v41_v57 = vld [vmem:[%s1883_s0 + $0x70] sm:$0xff]  ;;  %v1315_v58 = vpack.c.bf16 %v106_v54, %v105_v53  ;;  %v44_v61 = vld [vmem:[%s1883_s0 + $0x88] sm:$0xff] }
   0xf   :  { %v89_v59 = vld [vmem:[%s1884_s1 + $0x70] sm:$0xff]  ;;  %v90_v60 = vld [vmem:[%s1884_s1 + $0x78] sm:$0xff]  ;;  %v47_v63 = vld [vmem:[%s1883_s0 + $0xa0] sm:$0xff] }
  0x10   :  { %1359 = vmatpush3.bf16.msra.mxu1 %v1517_v37  ;;  %v1317_v62 = vpack.c.bf16 %v90_v60, %v89_v59 }
  0x11   :  { %1302 = vmatpush3.bf16.msra.mxu0 %v1301_v28  ;;  %1357 = vmatprep.subr.msk.bf16.mxu1 %vm1540_vm3, %v1530_v42 }
  0x12   :  { %1304 = vmatprep.subr.bf16.mxu0 %v1303_v32 }
  0x14   :  { %1360 = vmatpush3.bf16.msk.msra.mxu1 %vm1540_vm3, %v1530_v42 }
  0x15   :  { %1306 = vmatpush3.bf16.msra.mxu0 %v1305_v41 }
  0x16   :  { %1308 = vmatprep.subr.bf16.mxu0 %v1307_v43 }
  0x17   :  { %1197 = vmatmul.mubr.msk.f32.vlgmr.msra.gmra.mrb[0].mxu1 %vm120_vm1, %v38_v55 }
  0x18   :  { %1199 = vmatprep.mubr.msk.f32.mxu1 %vm120_vm1, %v41_v57 }
  0x19   :  { %1310 = vmatpush3.bf16.msra.mxu0 %v1309_v49 }
  0x1a   :  { %1312 = vmatprep.subr.bf16.mxu0 %v1311_v50 }
  0x1d   :  { %1314 = vmatpush3.bf16.msra.mxu0 %v1313_v56 }
  0x1e   :  { %1316 = vmatprep.subr.bf16.mxu0 %v1315_v58 }
  0x1f   :  { %12 = vsyncpa [#allocation3], 0  ;;  %1200 = vmatmul.mubr.msk.f32.gmra.mrb[2].mxu1 %vm120_vm1, %v44_v61  ;;  %v50_v0 = vld [vmem:[%s1883_s0 + $0xb8] sm:$0xff]  ;;  %v27_v1 = vld [vmem:[%s1883_s0] sm:$0xff]  ;;  %vm542_vm4 = vcmask 1041408   ;;  %vm493_vm5 = vcmask 408576  }
  0x20   :  { %1202 = vmatprep.mubr.msk.f32.mxu1 %vm120_vm1, %v47_v63  ;;  %v53_v2 = vld [vmem:[%s1883_s0 + $0xd0] sm:$0xff]  ;;  %v31_v3 = vld [vmem:[%s1883_s0 + $0x20] sm:$0xff]  ;;  %v56_v4 = vld [vmem:[%s1883_s0 + $0xe8] sm:$0xff]  ;;  %vm767_vm6 = vcmask 1045504   ;;  %vm718_vm8 = vcmask 244736  }
  0x21   :  { %1318 = vmatpush3.bf16.msra.mxu0 %v1317_v62  ;;  %v30_v5 = vld [vmem:[%s1883_s0 + $0x18] sm:$0xff]  ;;  %v59_v6 = vld [vmem:[%s1883_s0 + $0x100] sm:$0xff]  ;;  %v33_v9 = vld [vmem:[%s1883_s0 + $0x30] sm:$0xff] }
  0x22   :  { %1320 = vmatprep.subr.bf16.mxu0 %v1499_v30  ;;  %v34_v7 = vld [vmem:[%s1883_s0 + $0x38] sm:$0xff]  ;;  %v65_v10 = vld [vmem:[%s1883_s0 + $0x130] sm:$0xff]  ;;  %v68_v12 = vld [vmem:[%s1883_s0 + $0x148] sm:$0xff] }
  0x23   :  { %1203 = vmatmul.mubr.msk.f32.gmra.mrb[4].mxu1 %vm120_vm1, %v50_v0  ;;  %v62_v8 = vld [vmem:[%s1883_s0 + $0x118] sm:$0xff]  ;;  %v37_v11 = vld [vmem:[%s1883_s0 + $0x50] sm:$0xff]  ;;  %v36_v13 = vld [vmem:[%s1883_s0 + $0x48] sm:$0xff] }
  0x24   :  { %238 = vmatmul.mubr.f32.vlgmr.msra.gmra.mrb[0].mxu0 %v27_v1  ;;  %1205 = vmatprep.mubr.msk.f32.mxu1 %vm120_vm1, %v53_v2  ;;  %v71_v14 = vld [vmem:[%s1883_s0 + $0x160] sm:$0xff]  ;;  %v40_v15 = vld [vmem:[%s1883_s0 + $0x68] sm:$0xff]  ;;  %v74_v16 = vld [vmem:[%s1883_s0 + $0x178] sm:$0xff] }
  0x25   :  { %1322 = vmatpush3.bf16.msra.mxu0 %v1499_v30  ;;  %242 = vmatprep.mubr.f32.mxu0 %v31_v3  ;;  %v39_v17 = vld [vmem:[%s1883_s0 + $0x60] sm:$0xff]  ;;  %v42_v19 = vld [vmem:[%s1883_s0 + $0x78] sm:$0xff]  ;;  %v45_v21 = vld [vmem:[%s1883_s0 + $0x90] sm:$0xff] }
  0x26   :  { %1324 = vmatprep.subr.bf16.mxu0 %v1517_v37  ;;  %v43_v18 = vld [vmem:[%s1883_s0 + $0x80] sm:$0xff]  ;;  %v46_v20 = vld [vmem:[%s1883_s0 + $0x98] sm:$0xff]  ;;  %v49_v22 = vld [vmem:[%s1883_s0 + $0xb0] sm:$0xff] }
  0x27   :  { %1206 = vmatmul.mubr.msk.f32.gmra.mrb[6].mxu1 %vm120_vm1, %v56_v4  ;;  %v48_v23 = vld [vmem:[%s1883_s0 + $0xa8] sm:$0xff]  ;;  %v51_v25 = vld [vmem:[%s1883_s0 + $0xc0] sm:$0xff]  ;;  %v54_v27 = vld [vmem:[%s1883_s0 + $0xd8] sm:$0xff] }
  0x28   :  { %243 = vmatmul.mubr.f32.gmra.mrb[2].mxu0 %v30_v5  ;;  %1208 = vmatprep.mubr.msk.f32.mxu1 %vm120_vm1, %v59_v6  ;;  %v52_v24 = vld [vmem:[%s1883_s0 + $0xc8] sm:$0xff]  ;;  %v55_v26 = vld [vmem:[%s1883_s0 + $0xe0] sm:$0xff]  ;;  %v58_v28 = vld [vmem:[%s1883_s0 + $0xf8] sm:$0xff] }
  0x29   :  { %247 = vmatprep.mubr.f32.mxu0 %v34_v7  ;;  %1326 = vmatpush3.bf16.msra.mxu0 %v1517_v37  ;;  %v57_v29 = vld [vmem:[%s1883_s0 + $0xf0] sm:$0xff]  ;;  %v60_v31 = vld [vmem:[%s1883_s0 + $0x108] sm:$0xff]  ;;  %v63_v33 = vld [vmem:[%s1883_s0 + $0x120] sm:$0xff] }
  0x2a   :  { %1329 = vmatprep.subr.msk.bf16.mxu0 %vm1540_vm3, %v1530_v42  ;;  %v61_v30 = vld [vmem:[%s1883_s0 + $0x110] sm:$0xff]  ;;  %v64_v32 = vld [vmem:[%s1883_s0 + $0x128] sm:$0xff]  ;;  %v67_v34 = vld [vmem:[%s1883_s0 + $0x140] sm:$0xff] }
  0x2b   :  { %1209 = vmatmul.mubr.msk.f32.gmra.mrb[8].mxu1 %vm120_vm1, %v62_v8  ;;  %v66_v35 = vld [vmem:[%s1883_s0 + $0x138] sm:$0xff]  ;;  %v69_v37 = vld [vmem:[%s1883_s0 + $0x150] sm:$0xff]  ;;  %v72_v39 = vld [vmem:[%s1883_s0 + $0x168] sm:$0xff] }
  0x2c   :  { %248 = vmatmul.mubr.f32.gmra.mrb[4].mxu0 %v33_v9  ;;  %1211 = vmatprep.mubr.msk.f32.mxu1 %vm120_vm1, %v65_v10  ;;  %v70_v36 = vld [vmem:[%s1883_s0 + $0x158] sm:$0xff]  ;;  %v73_v38 = vld [vmem:[%s1883_s0 + $0x170] sm:$0xff]  ;;  %v32_v41 = vld [vmem:[%s1883_s0 + $0x28] sm:$0xff] }
  0x2d   :  { %252 = vmatprep.mubr.f32.mxu0 %v37_v11  ;;  %1332 = vmatpush3.bf16.msk.msra.mxu0 %vm1540_vm3, %v1530_v42  ;;  %v29_v40 = vld [vmem:[%s1883_s0 + $0x10] sm:$0xff]  ;;  %v479_v42 = vld [vmem:[%s1886_s3] sm:$0xff]  ;;  %v480_v43 = vld [vmem:[%s1886_s3 + $0x8] sm:$0xff] }
  0x2e   :  { %v1333_v44 = vpack.c.bf16 %v480_v43, %v479_v42  ;;  %v481_v45 = vld [vmem:[%s1886_s3 + $0x10] sm:$0xff]  ;;  %v482_v46 = vld [vmem:[%s1886_s3 + $0x18] sm:$0xff]  ;;  %v483_v48 = vld [vmem:[%s1886_s3 + $0x20] sm:$0xff] }
  0x2f   :  { %1212 = vmatmul.mubr.msk.f32.gmra.mrb[10].mxu1 %vm120_vm1, %v68_v12  ;;  %v1337_v47 = vpack.c.bf16 %v482_v46, %v481_v45  ;;  %v484_v49 = vld [vmem:[%s1886_s3 + $0x28] sm:$0xff]  ;;  %v485_v51 = vld [vmem:[%s1886_s3 + $0x30] sm:$0x3]  ;;  %v707_v52 = vld [vmem:[%s1888_s5] sm:$0xff] }
  0x30   :  { %253 = vmatmul.mubr.f32.gmra.mrb[6].mxu0 %v36_v13  ;;  %1214 = vmatprep.mubr.msk.f32.mxu1 %vm120_vm1, %v71_v14  ;;  %v1341_v50 = vpack.c.bf16 %v484_v49, %v483_v48  ;;  %v708_v53 = vld [vmem:[%s1888_s5 + $0x8] sm:$0xff]  ;;  %v1776_v10 = vld [vmem:[%s1885_s2] ss:$0 sm:$0xff]  ;;  %vm1350_vm7 = vmpackc.low %vm767_vm6, %vm1391_vm2 }
  0x31   :  { %257 = vmatprep.mubr.f32.mxu0 %v40_v15  ;;  %1334 = vmatprep.subr.bf16.mxu1 %v1333_v44  ;;  %v1766_v54 = vpack.c.bf16 %v708_v53, %v707_v52 }
  0x32   :  { %1336 = vmatpush3.bf16.msra.mxu1 %v1333_v44 }
  0x33   :  { %1215 = vmatmul.mubr.msk.f32.gmra.mrb[12].mxu1 %vm120_vm1, %v74_v16  ;;  %1338 = vmatprep.subr.bf16.mxu1 %v1337_v47 }
  0x34   :  { %258 = vmatmul.mubr.f32.gmra.mrb[8].mxu0 %v39_v17 }
  0x35   :  { %262 = vmatprep.mubr.f32.mxu0 %v43_v18 }
  0x36   :  { %1340 = vmatpush3.bf16.msra.mxu1 %v1337_v47 }
  0x37   :  { %1342 = vmatprep.subr.bf16.mxu1 %v1341_v50 }
  0x38   :  { %263 = vmatmul.mubr.f32.gmra.mrb[10].mxu0 %v42_v19 }
  0x39   :  { %267 = vmatprep.mubr.f32.mxu0 %v46_v20 }
  0x3a   :  { %1344 = vmatpush3.bf16.msra.mxu1 %v1341_v50 }
  0x3b   :  { %1229 = vmatprep.subr.msk.mxu1 %vm542_vm4, %v485_v51 }
  0x3c   :  { %268 = vmatmul.mubr.f32.gmra.mrb[12].mxu0 %v45_v21 }
  0x3d   :  { %272 = vmatprep.mubr.f32.mxu0 %v49_v22 }
  0x3e   :  { %1230 = vmatpush3.msk.msra.mxu1 %vm542_vm4, %v485_v51 }
  0x3f   :  { %1346 = vmatprep.subr.bf16.mxu1 %v1766_v54 }
  0x40   :  { %273 = vmatmul.mubr.f32.gmra.mrb[14].mxu0 %v48_v23 }
  0x41   :  { %277 = vmatprep.mubr.f32.mxu0 %v52_v24 }
  0x44   :  { %278 = vmatmul.mubr.f32.gmra.mrb[16].mxu0 %v51_v25 }
  0x45   :  { %282 = vmatprep.mubr.f32.mxu0 %v55_v26 }
  0x48   :  { %283 = vmatmul.mubr.f32.gmra.mrb[18].mxu0 %v54_v27 }
  0x49   :  { %287 = vmatprep.mubr.f32.mxu0 %v58_v28 }
  0x4c   :  { %288 = vmatmul.mubr.f32.gmra.mrb[20].mxu0 %v57_v29 }
  0x4d   :  { %292 = vmatprep.mubr.f32.mxu0 %v61_v30 }
  0x50   :  { %293 = vmatmul.mubr.f32.gmra.mrb[22].mxu0 %v60_v31 }
  0x51   :  { %297 = vmatprep.mubr.f32.mxu0 %v64_v32 }
  0x54   :  { %298 = vmatmul.mubr.f32.gmra.mrb[24].mxu0 %v63_v33 }
  0x55   :  { %302 = vmatprep.mubr.f32.mxu0 %v67_v34 }
  0x58   :  { %303 = vmatmul.mubr.f32.gmra.mrb[26].mxu0 %v66_v35 }
  0x59   :  { %307 = vmatprep.mubr.f32.mxu0 %v70_v36 }
  0x5c   :  { %308 = vmatmul.mubr.f32.gmra.mrb[28].mxu0 %v69_v37 }
  0x5d   :  { %312 = vmatprep.mubr.f32.mxu0 %v73_v38 }
  0x60   :  { %313 = vmatmul.mubr.f32.gmra.mrb[30].mxu0 %v72_v39 }
  0x61   :  { %1193 = vmatprep.mubr.msk.f32.mxu0 %vm120_vm1, %v29_v40 }
  0x64   :  { %1194 = vmatmul.mubr.msk.f32.vlgmr.msra.gmra.mrb[32].mxu0 %vm120_vm1, %v32_v41 }
  0xea   :  { %v1198_v55 = vpop.f32.mrb[0].mxu1 }
  0xeb   :  { %v394_v56 = vpop.f32.mrb[1].mxu1 }
  0xf2   :  { %v1201_v57 = vpop.f32.mrb[2].mxu1 }
  0xf3   :  { %v404_v58 = vpop.f32.mrb[3].mxu1 }
  0xf6   :  { %v1204_v59 = vpop.f32.mrb[4].mxu1 }
  0xf7   :  { %v1068_v60 = vpop.f32.mrb[0].mxu0  ;;  %v414_v61 = vpop.f32.mrb[5].mxu1 }
  0xf8   :  { %v1069_v62 = vpop.f32.mrb[1].mxu0 }
  0xf9   :  { %v1769_v63 = vadd.f32 %v1069_v62, %v1068_v60 }
  0xfa   :  { %v1207_v0 = vpop.f32.mrb[6].mxu1 }
  0xfb   :  { %v1071_v1 = vpop.f32.mrb[2].mxu0  ;;  %v424_v2 = vpop.f32.mrb[7].mxu1 }
  0xfc   :  { %v1072_v3 = vpop.f32.mrb[3].mxu0 }
  0xfd   :  { %v1771_v4 = vadd.f32 %v1072_v3, %v1071_v1 }
  0xfe   :  { %v1210_v5 = vpop.f32.mrb[8].mxu1 }
  0xff   :  { %v1074_v6 = vpop.f32.mrb[4].mxu0  ;;  %v434_v7 = vpop.f32.mrb[9].mxu1 }
 0x100   :  { %v1075_v8 = vpop.f32.mrb[5].mxu0 }
 0x101   :  { %v1076_v9 = vadd.f32 %v1075_v8, %v1074_v6 }
 0x102   :  { %v1213_v11 = vpop.f32.mrb[10].mxu1 }
 0x103   :  { %v1077_v12 = vpop.f32.mrb[6].mxu0  ;;  %v250_v13 = vadd.f32 %v1076_v9, %v1776_v10  ;;  %v444_v14 = vpop.f32.mrb[11].mxu1 }
 0x104   :  { %v1078_v15 = vpop.f32.mrb[7].mxu0 }
 0x105   :  { %v1079_v16 = vadd.f32 %v1078_v15, %v1077_v12  ;;  %v1779_v17 = vadd.f32 %v394_v56, %v250_v13 }
 0x106   :  { %v1781_v18 = vpop.f32.mrb[12].mxu1 }
 0x107   :  { %v255_v19 = vadd.f32 %v1079_v16, %v1776_v10  ;;  %v1080_v20 = vpop.f32.mrb[8].mxu0  ;;  %v454_v21 = vpop.f32.mrb[13].mxu1 }
 0x108   :  { %v1081_v22 = vpop.f32.mrb[9].mxu0 }
 0x109   :  { %v1784_v23 = vadd.f32 %v1198_v55, %v255_v19  ;;  %v1082_v24 = vadd.f32 %v1081_v22, %v1080_v20 }
 0x10b   :  { %v1083_v25 = vpop.f32.mrb[10].mxu0  ;;  %v260_v26 = vadd.f32 %v1082_v24, %v1776_v10 }
 0x10c   :  { %v1084_v27 = vpop.f32.mrb[11].mxu0 }
 0x10d   :  { %v1085_v28 = vadd.f32 %v1084_v27, %v1083_v25  ;;  %v1787_v29 = vadd.f32 %v404_v58, %v260_v26 }
 0x10f   :  { %v265_v30 = vadd.f32 %v1085_v28, %v1776_v10  ;;  %v1086_v31 = vpop.f32.mrb[12].mxu0 }
 0x110   :  { %v1087_v32 = vpop.f32.mrb[13].mxu0 }
 0x111   :  { %v1790_v33 = vadd.f32 %v1201_v57, %v265_v30  ;;  %v1088_v34 = vadd.f32 %v1087_v32, %v1086_v31 }
 0x113   :  { %v1089_v35 = vpop.f32.mrb[14].mxu0  ;;  %v270_v36 = vadd.f32 %v1088_v34, %v1776_v10  ;;  %v709_v34 = vld [vmem:[%s1888_s5 + $0x10] sm:$0xff] }
 0x114   :  { %v1090_v37 = vpop.f32.mrb[15].mxu0 }
 0x115   :  { %v1091_v38 = vadd.f32 %v1090_v37, %v1089_v35  ;;  %v1793_v39 = vadd.f32 %v414_v61, %v270_v36 }
 0x117   :  { %v275_v40 = vadd.f32 %v1091_v38, %v1776_v10  ;;  %v1092_v41 = vpop.f32.mrb[16].mxu0  ;;  %v469_v37 = vmax.f32 %v1793_v39, 0.0 }
 0x118   :  { %v1093_v42 = vpop.f32.mrb[17].mxu0 }
 0x119   :  { %v1796_v43 = vadd.f32 %v1204_v59, %v275_v40  ;;  %v1094_v44 = vadd.f32 %v1093_v42, %v1092_v41 }
 0x11b   :  { %v1095_v45 = vpop.f32.mrb[18].mxu0  ;;  %v280_v46 = vadd.f32 %v1094_v44, %v1776_v10 }
 0x11c   :  { %v1096_v47 = vpop.f32.mrb[19].mxu0 }
 0x11d   :  { %v1097_v48 = vadd.f32 %v1096_v47, %v1095_v45  ;;  %v1799_v49 = vadd.f32 %v424_v2, %v280_v46 }
 0x11f   :  { %v285_v50 = vadd.f32 %v1097_v48, %v1776_v10  ;;  %v1098_v51 = vpop.f32.mrb[20].mxu0 }
 0x120   :  { %v1099_v52 = vpop.f32.mrb[21].mxu0 }
 0x121   :  { %v1802_v53 = vadd.f32 %v1207_v0, %v285_v50  ;;  %v1100_v55 = vadd.f32 %v1099_v52, %v1098_v51 }
 0x123   :  { %v1101_v56 = vpop.f32.mrb[22].mxu0  ;;  %v290_v57 = vadd.f32 %v1100_v55, %v1776_v10 }
 0x124   :  { %v1102_v58 = vpop.f32.mrb[23].mxu0 }
 0x125   :  { %v1103_v59 = vadd.f32 %v1102_v58, %v1101_v56  ;;  %v435_v60 = vadd.f32 %v434_v7, %v290_v57 }
 0x127   :  { %v295_v61 = vadd.f32 %v1103_v59, %v1776_v10  ;;  %v1104_v62 = vpop.f32.mrb[24].mxu0  ;;  %v473_v38 = vmax.f32 %v435_v60, 0.0 }
 0x128   :  { %v1105_v1 = vpop.f32.mrb[25].mxu0 }
 0x129   :  { %v440_v3 = vadd.f32 %v1210_v5, %v295_v61  ;;  %v1106_v2 = vadd.f32 %v1105_v1, %v1104_v62  ;;  %v245_v5 = vadd.f32 %v1771_v4, %v1776_v10 }
 0x12b   :  { %v1107_v6 = vpop.f32.mrb[26].mxu0  ;;  %v300_v8 = vadd.f32 %v1106_v2, %v1776_v10 }
 0x12c   :  { %v1108_v9 = vpop.f32.mrb[27].mxu0 }
 0x12d   :  { %v1109_v12 = vadd.f32 %v1108_v9, %v1107_v6  ;;  %v445_v0 = vadd.f32 %v444_v14, %v300_v8  ;;  %v240_v14 = vadd.f32 %v1769_v63, %v1776_v10  ;;  %v465_v63 = vmax.f32 %v1779_v17, 0.0 }
 0x12e   :  { %v468_v17 = vmax.f32 %v1790_v33, 0.0  ;;  %v474_v33 = vmax.f32 %v440_v3, 0.0 }
 0x12f   :  { %v305_v13 = vadd.f32 %v1109_v12, %v1776_v10  ;;  %v1110_v15 = vpop.f32.mrb[28].mxu0  ;;  %v475_v39 = vmax.f32 %v445_v0, 0.0 }
 0x130   :  { %v1111_v16 = vpop.f32.mrb[29].mxu0 }
 0x131   :  { %v450_v19 = vadd.f32 %v1213_v11, %v305_v13  ;;  %v1112_v20 = vadd.f32 %v1111_v16, %v1110_v15 }
 0x133   :  { %v1113_v22 = vpop.f32.mrb[30].mxu0  ;;  %v310_v7 = vadd.f32 %v1112_v20, %v1776_v10  ;;  %v476_v40 = vmax.f32 %v450_v19, 0.0 }
 0x134   :  { %v1114_v24 = vpop.f32.mrb[31].mxu0 }
 0x135   :  { %v1115_v25 = vadd.f32 %v1114_v24, %v1113_v22  ;;  %v455_v26 = vadd.f32 %v454_v21, %v310_v7  ;;  %v710_v21 = vld [vmem:[%s1888_s5 + $0x18] sm:$0x3f] }
 0x136   :  { %v1349_v36 = vpack.c.bf16 %v710_v21, %v709_v34 }
 0x137   :  { %v315_v27 = vadd.f32 %v1115_v25, %v1776_v10  ;;  %v1195_v28 = vpop.f32.mrb[32].mxu0  ;;  %v466_v10 = vmax.f32 %v1784_v23, 0.0  ;;  %v471_v23 = vmax.f32 %v1799_v49, 0.0  ;;  %v477_v41 = vmax.f32 %v455_v26, 0.0 }
 0x138   :  { %v390_v30 = vadd.f32 %v1195_v28, %v245_v5  ;;  %v384_v31 = vpop.f32.mrb[33].mxu0 }
 0x139   :  { %v460_v11 = vadd.f32 %v1781_v18, %v315_v27  ;;  %v385_v32 = vadd.f32 %v384_v31, %v240_v14  ;;  %v467_v18 = vmax.f32 %v1787_v29, 0.0  ;;  %v472_v29 = vmax.f32 %v1802_v53, 0.0 }
 0x13a   :  { %v464_v35 = vmax.f32 %v390_v30, 0.0 }
 0x13b   :  { %v463_v4 = vmax.f32 %v385_v32, 0.0  ;;  %v478_v42 = vmax.f32 %v460_v11, 0.0 }
 0x13d   :  { %1231 = vmatprep.mubr.msk.f32.mxu1 %vm493_vm5, %v463_v4 }
 0x13e   :  { %1232 = vmatmul.mubr.msk.f32.vlgmr.msra.gmra.mrb[14].mxu1 %vm493_vm5, %v464_v35 }
 0x13f   :  { %1234 = vmatprep.mubr.msk.f32.mxu1 %vm493_vm5, %v465_v63  ;;  %1348 = vmatpush3.bf16.msra.mxu1 %v1766_v54  ;;  %v470_v54 = vmax.f32 %v1796_v43, 0.0  ;;  %v1000_v43 = vld [vmem:[%s1887_s4] ss:$0 sm:$0xff] }
 0x140   :  { %1351 = vmatprep.subr.msk.bf16.mxu1 %vm1350_vm7, %v1349_v36 }
 0x142   :  { %1235 = vmatmul.mubr.msk.f32.gmra.mrb[16].mxu1 %vm493_vm5, %v466_v10 }
 0x143   :  { %1237 = vmatprep.mubr.msk.f32.mxu1 %vm493_vm5, %v467_v18  ;;  %1354 = vmatpush3.bf16.msk.msra.mxu1 %vm1350_vm7, %v1349_v36  ;;  %v1018_v36 = vld [vmem:[%s1889_s6] ss:$0 sm:$0xff]  ;;  %s1392_s6 = smov [#allocation2]  }
 0x144   :  { %s974_s30 = sshll.u32 %s1392_s6, 4  ;;  %s975_s30 = int_to_ptr.vmem [resolvable:$true] %s974_s30 }
 0x145   :  { %s1367_s8 = scalar_lea.vmem %s975_s30, 64  ;;  %p1372_p1 = scmp.lt.s32.totalorder %s975_s30, %s975_s30 }
 0x146   :  { %1238 = vmatmul.mubr.msk.f32.gmra.mrb[18].mxu1 %vm493_vm5, %v468_v17  ;;  %p1368_p0 = scmp.ne.s32.totalorder %s975_s30, %s1367_s8  ;;  %p1373_p2 = scmp.lt.s32.totalorder %s1367_s8, %s1367_s8 }
 0x147   :  { %1240 = vmatprep.mubr.msk.f32.mxu1 %vm493_vm5, %v469_v37 }
 0x148   :  { %p1374_p3 = por %p1373_p2, %p1372_p1 }
 0x14a   :  { %1241 = vmatmul.mubr.msk.f32.gmra.mrb[20].mxu1 %vm493_vm5, %v470_v54  ;;  %p1375_p4 = pnand %p1374_p3, %p1368_p0 }
 0x14b   :  { %1243 = vmatprep.mubr.msk.f32.mxu1 %vm493_vm5, %v471_v23 }
 0x14e   :  { %1244 = vmatmul.mubr.msk.f32.gmra.mrb[22].mxu1 %vm493_vm5, %v472_v29 }
 0x14f   :  { %1246 = vmatprep.mubr.msk.f32.mxu1 %vm493_vm5, %v473_v38 }
 0x152   :  { %1247 = vmatmul.mubr.msk.f32.gmra.mrb[24].mxu1 %vm493_vm5, %v474_v33 }
 0x153   :  { %1249 = vmatprep.mubr.msk.f32.mxu1 %vm493_vm5, %v475_v39 }
 0x156   :  { %1250 = vmatmul.mubr.msk.f32.gmra.mrb[26].mxu1 %vm493_vm5, %v476_v40 }
 0x157   :  { %1252 = vmatprep.mubr.msk.f32.mxu1 %vm493_vm5, %v477_v41 }
 0x15a   :  { %1253 = vmatmul.mubr.msk.f32.gmra.mrb[28].mxu1 %vm493_vm5, %v478_v42 }
 0x211   :  { %v1233_v44 = vpop.f32.mrb[14].mxu1 }
 0x212   :  { %v618_v45 = vadd.f32 %v1233_v44, %v1000_v43  ;;  %v612_v46 = vpop.f32.mrb[15].mxu1 }
 0x213   :  { %v613_v47 = vadd.f32 %v1000_v43, %v612_v46 }
 0x214   :  { %v692_v50 = vmax.f32 %v618_v45, 0.0 }
 0x215   :  { %v691_v48 = vmax.f32 %v613_v47, 0.0  ;;  %v1236_v49 = vpop.f32.mrb[16].mxu1 }
 0x216   :  { %v628_v51 = vadd.f32 %v1236_v49, %v1000_v43  ;;  %v622_v52 = vpop.f32.mrb[17].mxu1 }
 0x217   :  { %v623_v53 = vadd.f32 %v1000_v43, %v622_v52  ;;  %1263 = vmatprep.mubr.msk.f32.mxu1 %vm718_vm8, %v691_v48 }
 0x218   :  { %1264 = vmatmul.mubr.msk.f32.vlgmr.msra.gmra.mrb[30].mxu1 %vm718_vm8, %v692_v50  ;;  %v694_v57 = vmax.f32 %v628_v51, 0.0 }
 0x219   :  { %v693_v55 = vmax.f32 %v623_v53, 0.0  ;;  %v1239_v56 = vpop.f32.mrb[18].mxu1 }
 0x21a   :  { %v638_v58 = vadd.f32 %v1239_v56, %v1000_v43  ;;  %v632_v59 = vpop.f32.mrb[19].mxu1 }
 0x21b   :  { %v633_v60 = vadd.f32 %v1000_v43, %v632_v59  ;;  %1266 = vmatprep.mubr.msk.f32.mxu1 %vm718_vm8, %v693_v55 }
 0x21c   :  { %1267 = vmatmul.mubr.msk.f32.gmra.mrb[32].mxu1 %vm718_vm8, %v694_v57  ;;  %v696_v1 = vmax.f32 %v638_v58, 0.0 }
 0x21d   :  { %v695_v61 = vmax.f32 %v633_v60, 0.0  ;;  %v1242_v62 = vpop.f32.mrb[20].mxu1 }
 0x21e   :  { %v648_v3 = vadd.f32 %v1242_v62, %v1000_v43  ;;  %v642_v2 = vpop.f32.mrb[21].mxu1 }
 0x21f   :  { %v643_v6 = vadd.f32 %v1000_v43, %v642_v2  ;;  %1269 = vmatprep.mubr.msk.f32.mxu1 %vm718_vm8, %v695_v61 }
 0x220   :  { %1270 = vmatmul.mubr.msk.f32.gmra.mrb[34].mxu1 %vm718_vm8, %v696_v1  ;;  %v698_v12 = vmax.f32 %v648_v3, 0.0 }
 0x221   :  { %v697_v8 = vmax.f32 %v643_v6, 0.0  ;;  %v1245_v9 = vpop.f32.mrb[22].mxu1 }
 0x222   :  { %v658_v0 = vadd.f32 %v1245_v9, %v1000_v43  ;;  %v652_v13 = vpop.f32.mrb[23].mxu1 }
 0x223   :  { %v653_v15 = vadd.f32 %v1000_v43, %v652_v13  ;;  %1272 = vmatprep.mubr.msk.f32.mxu1 %vm718_vm8, %v697_v8 }
 0x224   :  { %1273 = vmatmul.mubr.msk.f32.gmra.mrb[36].mxu1 %vm718_vm8, %v698_v12  ;;  %v700_v20 = vmax.f32 %v658_v0, 0.0 }
 0x225   :  { %v699_v16 = vmax.f32 %v653_v15, 0.0  ;;  %v1248_v19 = vpop.f32.mrb[24].mxu1 }
 0x226   :  { %v668_v22 = vadd.f32 %v1248_v19, %v1000_v43  ;;  %v662_v7 = vpop.f32.mrb[25].mxu1 }
 0x227   :  { %v663_v24 = vadd.f32 %v1000_v43, %v662_v7  ;;  %1275 = vmatprep.mubr.msk.f32.mxu1 %vm718_vm8, %v699_v16 }
 0x228   :  { %1276 = vmatmul.mubr.msk.f32.gmra.mrb[38].mxu1 %vm718_vm8, %v700_v20  ;;  %v702_v5 = vmax.f32 %v668_v22, 0.0 }
 0x229   :  { %v701_v25 = vmax.f32 %v663_v24, 0.0  ;;  %v1251_v26 = vpop.f32.mrb[26].mxu1 }
 0x22a   :  { %v678_v27 = vadd.f32 %v1251_v26, %v1000_v43  ;;  %v672_v28 = vpop.f32.mrb[27].mxu1 }
 0x22b   :  { %v673_v14 = vadd.f32 %v1000_v43, %v672_v28  ;;  %1278 = vmatprep.mubr.msk.f32.mxu1 %vm718_vm8, %v701_v25 }
 0x22c   :  { %1279 = vmatmul.mubr.msk.f32.gmra.mrb[40].mxu1 %vm718_vm8, %v702_v5  ;;  %v704_v11 = vmax.f32 %v678_v27, 0.0 }
 0x22d   :  { %v703_v30 = vmax.f32 %v673_v14, 0.0  ;;  %v1254_v31 = vpop.f32.mrb[28].mxu1 }
 0x22e   :  { %v688_v32 = vadd.f32 %v1254_v31, %v1000_v43  ;;  %v682_v34 = vpop.f32.mrb[29].mxu1 }
 0x22f   :  { %v683_v21 = vadd.f32 %v1000_v43, %v682_v34  ;;  %1281 = vmatprep.mubr.msk.f32.mxu1 %vm718_vm8, %v703_v30 }
 0x230   :  { %1282 = vmatmul.mubr.msk.f32.gmra.mrb[42].mxu1 %vm718_vm8, %v704_v11  ;;  %v706_v35 = vmax.f32 %v688_v32, 0.0 }
 0x231   :  { %v705_v4 = vmax.f32 %v683_v21, 0.0 }
 0x233   :  { %1284 = vmatprep.mubr.msk.f32.mxu1 %vm718_vm8, %v705_v4 }
 0x234   :  { %1285 = vmatmul.mubr.msk.f32.gmra.mrb[44].mxu1 %vm718_vm8, %v706_v35 }
 0x2eb   :  { %v1265_v63 = vpop.f32.mrb[30].mxu1 }
 0x2ec   :  { %v837_v10 = vpop.f32.mrb[31].mxu1  ;;  %v843_v54 = vadd.f32 %v1265_v63, %v1018_v36 }
 0x2ed   :  { %v838_v18 = vadd.f32 %v1018_v36, %v837_v10 }
 0x2ef   :  { %v1268_v17 = vpop.f32.mrb[32].mxu1  ;;  %916 = vxpose.xlu0.b32.start [1/16] (narrow) %v838_v18, 8 }
 0x2f0   :  { %v847_v37 = vpop.f32.mrb[33].mxu1  ;;  %v853_v40 = vadd.f32 %v1268_v17, %v1018_v36 }
 0x2f1   :  { %v848_v38 = vadd.f32 %v1018_v36, %v847_v37 }
 0x2f3   :  { %v1271_v23 = vpop.f32.mrb[34].mxu1  ;;  %917 = vxpose.xlu0.b32.cont [2/16] (narrow) %v843_v54, 8 }
 0x2f4   :  { %v857_v29 = vpop.f32.mrb[35].mxu1  ;;  %v863_v46 = vadd.f32 %v1271_v23, %v1018_v36 }
 0x2f5   :  { %v858_v43 = vadd.f32 %v1018_v36, %v857_v29 }
 0x2f7   :  { %v1274_v33 = vpop.f32.mrb[36].mxu1  ;;  %918 = vxpose.xlu0.b32.cont [3/16] (narrow) %v848_v38, 8 }
 0x2f8   :  { %v867_v39 = vpop.f32.mrb[37].mxu1  ;;  %v873_v52 = vadd.f32 %v1274_v33, %v1018_v36 }
 0x2f9   :  { %v868_v49 = vadd.f32 %v1018_v36, %v867_v39 }
 0x2fb   :  { %v1277_v41 = vpop.f32.mrb[38].mxu1  ;;  %919 = vxpose.xlu0.b32.cont [4/16] (narrow) %v853_v40, 8 }
 0x2fc   :  { %v877_v42 = vpop.f32.mrb[39].mxu1  ;;  %v883_v55 = vadd.f32 %v1277_v41, %v1018_v36 }
 0x2fd   :  { %v878_v53 = vadd.f32 %v1018_v36, %v877_v42 }
 0x2ff   :  { %v1280_v44 = vpop.f32.mrb[40].mxu1  ;;  %920 = vxpose.xlu0.b32.cont [5/16] (narrow) %v858_v43, 8 }
 0x300   :  { %v887_v45 = vpop.f32.mrb[41].mxu1  ;;  %v893_v57 = vadd.f32 %v1280_v44, %v1018_v36 }
 0x301   :  { %v888_v56 = vadd.f32 %v1018_v36, %v887_v45 }
 0x303   :  { %v1283_v47 = vpop.f32.mrb[42].mxu1  ;;  %921 = vxpose.xlu0.b32.cont [6/16] (narrow) %v863_v46, 8 }
 0x304   :  { %v897_v48 = vpop.f32.mrb[43].mxu1  ;;  %v903_v59 = vadd.f32 %v1283_v47, %v1018_v36 }
 0x305   :  { %v898_v58 = vadd.f32 %v1018_v36, %v897_v48 }
 0x307   :  { %v1286_v50 = vpop.f32.mrb[44].mxu1  ;;  %922 = vxpose.xlu0.b32.cont [7/16] (narrow) %v868_v49, 8 }
 0x308   :  { %v907_v51 = vpop.f32.mrb[45].mxu1  ;;  %v913_v61 = vadd.f32 %v1286_v50, %v1018_v36 }
 0x309   :  { %v908_v60 = vadd.f32 %v1018_v36, %v907_v51 }
 0x30b   :  { %923 = vxpose.xlu0.b32.cont [8/16] (narrow) %v873_v52, 8 }
 0x30f   :  { %924 = vxpose.xlu0.b32.cont [9/16] (narrow) %v878_v53, 8 }
 0x313   :  { %925 = vxpose.xlu0.b32.cont [10/16] (narrow) %v883_v55, 8 }
 0x317   :  { %926 = vxpose.xlu0.b32.cont [11/16] (narrow) %v888_v56, 8 }
 0x31b   :  { %927 = vxpose.xlu0.b32.cont [12/16] (narrow) %v893_v57, 8 }
 0x31f   :  { %928 = vxpose.xlu0.b32.cont [13/16] (narrow) %v898_v58, 8 }
 0x323   :  { %929 = vxpose.xlu0.b32.cont [14/16] (narrow) %v903_v59, 8 }
 0x327   :  { %930 = vxpose.xlu0.b32.cont [15/16] (narrow) %v908_v60, 8 }
 0x32b   :  { %931 = vxpose.xlu0.b32.end [16/16] (narrow) %v913_v61, 8 }
 0x36f   :  { %v932_v62 = vpop.trf.xlu0 }
 0x370   :  { %v948_v1 = vsel %vm169_vm0, %v932_v62, -inf }
 0x371   :  { %v949_v3 = vrot.slane %v948_v1, 4 }
 0x373   :  { %v950_v2 = vmax.f32 %v948_v1, %v949_v3 }
 0x375   :  { %v951_v6 = vrot.slane %v950_v2, 2 }
 0x377   :  { %v952_v8 = vmax.f32 %v950_v2, %v951_v6 }
 0x379   :  { %v953_v9 = vrot.slane %v952_v8, 1 }
 0x37b   :  { %v954_v12 = vmax.f32 %v952_v8, %v953_v9 }
 0x37d   :  { %v955_v0 = vsub.f32 %v932_v62, %v954_v12 }
 0x37f   :  { %v956_v13 = vmul.f32 1.442695, %v955_v0 }
 0x381   :  { %1363 = vpow2.f32 %v956_v13 }
 0x38b   :  { %v1364_v15 = vpop.eup %1363 }
 0x38c   :  { %v958_v16 = vsel %vm169_vm0, %v1364_v15, 0.0 }
 0x38d   :  { %v959_v19 = vrot.slane %v958_v16, 4 }
 0x38f   :  { %v960_v20 = vadd.f32 %v959_v19, %v958_v16 }
 0x391   :  { %v961_v22 = vrot.slane %v960_v20, 2 }
 0x393   :  { %v962_v7 = vadd.f32 %v961_v22, %v960_v20 }
 0x395   :  { %v963_v24 = vrot.slane %v962_v7, 1 }
 0x397   :  { %v964_v25 = vadd.f32 %v963_v24, %v962_v7 }
 0x399   :  { %1365 = vrcp.f32 %v964_v25 }
 0x3a3   :  { %v1366_v26 = vpop.eup %1365 }
 0x3a4   :  { %v966_v5 = vmul.f32 %v1366_v26, %v1364_v15 }
 0x3a6   :  { %967 = vst [vmem:[#allocation2] sm:$0xf] %v966_v5 }
 0x3a7   :  { %1378 = shalt.err (!%p1375_p4)
}
 0x3a8   :  { %s1379_s11 = scalar_lea.hbm %s1890_s7, 64 }
 0x3a9   :  { %p1380_p5 = scmp.ne.s32.totalorder %s1890_s7, %s1379_s11  ;;  %p1383_p6 = scmp.lt.u32.totalorder %s1379_s11, %s1890_s7 }
 0x3ab   :  { %p1385_p7 = pnand %p1383_p6, %p1380_p5 }
 0x3ad   :  { %1388 = shalt.err (!%p1385_p7)
}
 0x3ae   :  { %977 = dma.vmem_to_hbm [thread:$0]  %s975_s30, 64, %s1890_s7, [#allocation3]  }
 0x3af   :  { %1389 = dma.done.wait [#allocation3], 64  }
 0x3b0   :  { %1390 = vsyncadd [#allocation3], 4294967232 }
 0x3b1   :  { %981 = vsyncpa [#allocation3], 1 }

</bundles_post_ra>
